<compile_context>
chip_gen: v6e
topology: v6e:2x2x1
jax: 0.10.0
libtpu: 0.0.40
codegen_flags: <defaults>
</compile_context>

<pallas_src>
import functools

import jax
import jax.numpy as jnp
from jax.experimental import pallas as pl
from jax.experimental.pallas import tpu as pltpu

LANE_W = 1024            # lane-dense trailing dim (multiple of 128 -> unmasked vst)
BLOCK_ROWS = 512         # (512, 1024) f32 tile = 2 MiB per array per tile
PALLAS_MIN_BYTES = 256 * 1024   # below this, skip Pallas and let XLA fuse the add


def _add_kernel(x_ref, y_ref, o_ref):
    # Elementwise "net": o = x + y on the VPU, one lane-dense tile at a time.
    o_ref[...] = x_ref[...] + y_ref[...]


def _pallas_add_flat(xf, yf):
    """Tiled, pipelined elementwise add over a lane-dense (rows, LANE_W) view."""
    rows, cols = xf.shape
    block_rows = min(BLOCK_ROWS, rows)   # tiny inputs: one block == full array
    grid = (pl.cdiv(rows, block_rows),)
    return pl.pallas_call(
        _add_kernel,
        out_shape=jax.ShapeDtypeStruct((rows, cols), xf.dtype),
        grid_spec=pltpu.PrefetchScalarGridSpec(
            num_scalar_prefetch=0,
            grid=grid,
            in_specs=[
                pl.BlockSpec((block_rows, cols), lambda i: (i, 0)),
                pl.BlockSpec((block_rows, cols), lambda i: (i, 0)),
            ],
            out_specs=pl.BlockSpec((block_rows, cols), lambda i: (i, 0)),
        ),
        compiler_params=pltpu.CompilerParams(
            # Purely data-parallel: shard grid rows across TensorCores (v7x).
            dimension_semantics=("parallel",),
        ),
    )(xf, yf)


def pallas_net(x, y, *, min_pallas_bytes=PALLAS_MIN_BYTES):
    """The synthetic `net(x, y)` hot path.

    Small inputs: plain `x + y` (XLA fuses it; a custom call would be pure
    dispatch/DMA overhead). Large inputs: lane-dense, tiled, pipelined Pallas
    add that stays on the HBM roofline and within v7x's 32 MiB scoped VMEM.
    """
    assert x.shape == y.shape and x.dtype == y.dtype
    orig_shape = x.shape
    size = x.size
    nbytes = size * jnp.dtype(x.dtype).itemsize

    if nbytes < min_pallas_bytes:
        # Threshold dispatch: tiny workload -> let XLA fuse the add.
        return x + y

    # Lane-dense view, padded so the trailing dim is a full multiple of 1024
    # (one f32 vreg) -> only unmasked vector stores inside the kernel.
    pad = (-size) % LANE_W
    xf = x.reshape(-1)
    yf = y.reshape(-1)
    if pad:
        xf = jnp.pad(xf, (0, pad))
        yf = jnp.pad(yf, (0, pad))
    xf = xf.reshape(-1, LANE_W)
    yf = yf.reshape(-1, LANE_W)

    out = _pallas_add_flat(xf, yf).reshape(-1)
    if pad:
        out = out[:size]
    return out.reshape(orig_shape)


class DoNothing:
    """JAX mirror of the PyTorch DoNothing wrapper: forward delegates to net."""

    def __init__(self, net):
        self.net = net

    def __call__(self, x, y):
        return self.net(x, y)


if __name__ == "__main__":
    key = jax.random.PRNGKey(0)
    kx, ky, kx2, ky2 = jax.random.split(key, 4)

    # --- 1) Small shape implied by the module; force the Pallas path so the
    #        kernel itself is compiled and exercised. -------------------------
    B, C, H, W = 2, 4, 16, 16
    x = jax.random.normal(kx, (B, C, H, W), dtype=jnp.float32)
    y = jax.random.normal(ky, (B, C, H, W), dtype=jnp.float32)

    model = DoNothing(jax.jit(functools.partial(pallas_net, min_pallas_bytes=0)))
    out = jax.block_until_ready(model(x, y))
    ref = x + y
    assert out.shape == (B, C, H, W) and out.dtype == x.dtype
    assert jnp.allclose(out, ref, atol=1e-6, rtol=1e-6)

    # --- 2) Same small shape through the default dispatch: takes the fused
    #        XLA path (the recommended behavior below the size threshold). ----
    model_auto = DoNothing(jax.jit(pallas_net))
    out_small = jax.block_until_ready(model_auto(x, y))
    assert jnp.allclose(out_small, ref, atol=1e-6, rtol=1e-6)

    # --- 3) Larger, non-128-multiple shape: exercises the tiled grid path
    #        (grid > 1, partial last block) plus pad/slice handling. ----------
    big_shape = (8, 8, 100, 130)   # 832_000 f32 elems ~= 3.2 MiB per operand
    xb = jax.random.normal(kx2, big_shape, dtype=jnp.float32)
    yb = jax.random.normal(ky2, big_shape, dtype=jnp.float32)
    out_big = jax.block_until_ready(model_auto(xb, yb))
    assert out_big.shape == big_shape and out_big.dtype == xb.dtype
    assert jnp.allclose(out_big, xb + yb, atol=1e-6, rtol=1e-6)

    print("KERNEL_OK")
</pallas_src>

<mosaic_0001>
module attributes {stable_mosaic.version = 11 : i64} {
  func.func @_add_kernel(%arg0: i32, %arg1: memref<2x1024xf32, #tpu.memory_space<vmem>>, %arg2: memref<2x1024xf32, #tpu.memory_space<vmem>>, %arg3: memref<2x1024xf32, #tpu.memory_space<vmem>>) attributes {dimension_semantics = [#tpu.dimension_semantics<parallel>], iteration_bounds = array<i64: 1>, scalar_prefetch = 0 : i64, scratch_operands = 0 : i64, tpu.core_type = #tpu.core_type<tc>, window_params = [{transform_indices = @transform_0, window_bounds = array<i64: 2, 1024>}, {transform_indices = @transform_1, window_bounds = array<i64: 2, 1024>}, {transform_indices = @transform_2, window_bounds = array<i64: 2, 1024>}]} {
    %c0 = arith.constant 0 : index
    %c0_0 = arith.constant 0 : index
    %0 = vector.load %arg1[%c0, %c0_0] : memref<2x1024xf32, #tpu.memory_space<vmem>>, vector<2x1024xf32>
    %c0_1 = arith.constant 0 : index
    %c0_2 = arith.constant 0 : index
    %1 = vector.load %arg2[%c0_1, %c0_2] : memref<2x1024xf32, #tpu.memory_space<vmem>>, vector<2x1024xf32>
    %2 = arith.addf %0, %1 : vector<2x1024xf32>
    %c0_3 = arith.constant 0 : index
    %c0_4 = arith.constant 0 : index
    %3 = vector.load %arg3[%c0_3, %c0_4] : memref<2x1024xf32, #tpu.memory_space<vmem>>, vector<2x1024xf32>
    tpu.vector_store %arg3[%c0_3, %c0_4], %2 {strides = array<i32>} : memref<2x1024xf32, #tpu.memory_space<vmem>>, vector<2x1024xf32>,
    return
  }
  func.func @transform_0(%arg0: i32) -> (i32, i32) {
    %c0_i32 = arith.constant 0 : i32
    %c0_i32_0 = arith.constant 0 : i32
    return %arg0, %c0_i32 : i32, i32
  }
  func.func @transform_1(%arg0: i32) -> (i32, i32) {
    %c0_i32 = arith.constant 0 : i32
    %c0_i32_0 = arith.constant 0 : i32
    return %arg0, %c0_i32 : i32, i32
  }
  func.func @transform_2(%arg0: i32) -> (i32, i32) {
    %c0_i32 = arith.constant 0 : i32
    %c0_i32_0 = arith.constant 0 : i32
    return %arg0, %c0_i32 : i32, i32
  }
}

</mosaic_0001>

<bundles_post_ra>
// kernel: pallas_net.1
= control target key start
LH: loop header
LB: loop body
LE: loop exit
PB: predicated region body
PF: predicated region fallthrough
CT: control target
= control target key end

     0   :  { %s56_s0 = inlined_call_operand.vmem [shape: f32[2,1024], index: 0, kind: input, shape index: {}]   ;;  %s57_s1 = inlined_call_operand.vmem [shape: f32[2,1024], index: 1, kind: input, shape index: {}]   ;;  %s58_s2 = inlined_call_operand.vmem [shape: f32[2,1024], index: 2, kind: output, shape index: {}]  }
   0x1   :  { %v11_v0 = vld [vmem:[%s56_s0] sm:$0xff]  ;;  %v12_v2 = vld [vmem:[%s56_s0 + $0x8] sm:$0xff] }
   0x2   :  { %v13_v1 = vld [vmem:[%s57_s1] sm:$0xff]  ;;  %v14_v4 = vld [vmem:[%s57_s1 + $0x8] sm:$0xff] }
   0x3   :  { %v15_v3 = vadd.f32 %v13_v1, %v11_v0  ;;  %v16_v5 = vadd.f32 %v14_v4, %v12_v2 }
   0x5   :  { %17 = vst [vmem:[%s58_s2] sm:$0xff] %v15_v3  ;;  %18 = vst [vmem:[%s58_s2 + $0x8] sm:$0xff] %v16_v5 }

</bundles_post_ra>
